<compile_context>
chip_gen: v7x
topology: tpu7x:2x2x1
jax: 0.10.0
libtpu: 0.0.40
codegen_flags: <defaults>
</compile_context>

<pallas_src>
import jax
import jax.numpy as jnp
from jax.experimental import pallas as pl
from jax.experimental.pallas import tpu as pltpu


def _round_up(x, m):
    return (x + m - 1) // m * m


def _default_tile_s():
    # v7x: 64 MiB VMEM / TC and ~3.2 TB/s HBM -> at tile=1024 the per-step DMA
    # is shorter than the ~0.35 us grid-step overhead, so default bigger tiles
    # there. Anything else (or an unknown runtime) gets the safe 2048 default.
    try:
        if pltpu.get_tpu_info().vmem_capacity_bytes <= (64 << 20):
            return 4096
    except Exception:
        pass
    return 2048


def _pick_tile_lanes(n_lanes, max_lanes, min_steps, batch):
    """Largest lane-count k such that k | n_lanes, k <= max_lanes and the
    total grid (batch * n_lanes/k) has >= min_steps steps (so both v7x
    TensorCores get work).  Falls back to the largest divisor under the cap."""
    fallback = 1
    found = False
    for k in range(min(max_lanes, n_lanes), 0, -1):
        if n_lanes % k != 0:
            continue
        if not found:
            fallback = k
            found = True
        if batch * (n_lanes // k) >= min_steps:
            return k
    return fallback


def mlp_kernel(x_ref, w1t_ref, b1_ref, w2t_ref, b2_ref, o_ref):
    # x_ref:   (C_in, TS)  native-dtype, feature-major spatial tile
    # w1t_ref: (HID, C_in) b1_ref: (HID, 1)   (weights in compute dtype)
    # w2t_ref: (CLS, HID)  b2_ref: (CLS, 1)   (biases f32)
    # o_ref:   (CLS, TS)   lane-dense output tile
    x = x_ref[...].astype(w1t_ref.dtype)       # in-kernel cast; hides under DMA
    h = jnp.dot(w1t_ref[...], x, preferred_element_type=jnp.float32)
    h = jnp.maximum(h + b1_ref[...], 0.0)      # f32 bias + ReLU (VPU filler)
    out = jnp.dot(w2t_ref[...], h.astype(w2t_ref.dtype),
                  preferred_element_type=jnp.float32)
    o_ref[...] = (out + b2_ref[...]).astype(o_ref.dtype)


def simple_mlp_forward(x_nchw, w1, b1, w2, b2, *, tile_s=None,
                       compute_dtype=jnp.bfloat16, out_dtype=jnp.float32):
    """x_nchw: (B, C, H, W) in its native dtype (streamed as-is).
    w1: (C, hidden), b1: (1, hidden), w2: (hidden, classes), b2: (1, classes).
    Returns (B, num_classes, H, W) in out_dtype (f32 default, matching the
    PyTorch forward). compute_dtype=bf16 halves weight/x-cast width on the MXU
    path; pass float32 for a bit-comparable f32 datapath."""
    B, C, H, W = x_nchw.shape
    hidden = w1.shape[1]
    num_classes = w2.shape[1]
    S = H * W

    if tile_s is None:
        tile_s = _default_tile_s()

    # Feature-major: keep NCHW layout, flatten spatial only (free reshape).
    x_flat = x_nchw.reshape(B, C, S)

    # Pad spatial only to lane granularity (128); the tile is a 128-multiple
    # divisor of the padded extent, so every block is full (no masking) and
    # the cheap slice below is only needed when padding was actually added.
    s_pad = _round_up(S, 128)
    if s_pad != S:
        x_flat = jnp.pad(x_flat, ((0, 0), (0, 0), (0, s_pad - S)))
    n_lanes = s_pad // 128
    tile_lanes = _pick_tile_lanes(n_lanes, max(tile_s // 128, 1),
                                  min_steps=2, batch=B)
    tile = tile_lanes * 128
    n_tiles = n_lanes // tile_lanes

    # Small params: weights in compute dtype (tiny casts), biases f32 columns
    # (added to the f32 accumulator).
    w1t = jnp.transpose(w1).astype(compute_dtype)               # (hidden, C)
    w2t = jnp.transpose(w2).astype(compute_dtype)               # (classes, hidden)
    b1c = jnp.reshape(b1, (hidden, 1)).astype(jnp.float32)
    b2c = jnp.reshape(b2, (num_classes, 1)).astype(jnp.float32)

    # VMEM budget: double-buffered x/out streams, resident weights, plus the
    # in-kernel temporaries (compute-dtype x copy, f32/bf16 h, f32 out).
    x_item = jnp.dtype(x_flat.dtype).itemsize
    o_item = jnp.dtype(out_dtype).itemsize
    c_item = jnp.dtype(compute_dtype).itemsize
    vmem_est = (2 * C * tile * x_item                       # x tiles (2-buf)
                + C * tile * c_item                         # in-kernel x cast
                + hidden * tile * (4 + c_item)              # h f32 + cast
                + num_classes * tile * (4 + 2 * o_item)     # out temp + 2-buf
                + 2 * (hidden * C + num_classes * hidden) * c_item
                + 4 * (hidden + num_classes) * 4)
    vmem_limit = int(min(max(2 * vmem_est, 16 << 20), 64 << 20))

    grid = (B, n_tiles)
    out_flat = pl.pallas_call(
        mlp_kernel,
        out_shape=jax.ShapeDtypeStruct((B, num_classes, s_pad), out_dtype),
        grid_spec=pl.GridSpec(
            grid=grid,
            in_specs=[
                pl.BlockSpec((None, C, tile), lambda b, s: (b, 0, s)),      # x
                pl.BlockSpec((hidden, C), lambda b, s: (0, 0)),             # W1^T
                pl.BlockSpec((hidden, 1), lambda b, s: (0, 0)),             # b1
                pl.BlockSpec((num_classes, hidden), lambda b, s: (0, 0)),   # W2^T
                pl.BlockSpec((num_classes, 1), lambda b, s: (0, 0)),        # b2
            ],
            out_specs=pl.BlockSpec((None, num_classes, tile),
                                   lambda b, s: (b, 0, s)),
        ),
        compiler_params=pltpu.CompilerParams(
            dimension_semantics=("parallel", "parallel"),
            vmem_limit_bytes=vmem_limit),
    )(x_flat, w1t, b1c, w2t, b2c)

    if s_pad != S:
        out_flat = out_flat[:, :, :S]
    return out_flat.reshape(B, num_classes, H, W)


def init_params(key, input_dim=384, hidden=128, num_classes=20):
    # Deterministic init mimicking nn.Linear (uniform +-1/sqrt(fan_in)).
    k1, k2, k3, k4 = jax.random.split(key, 4)
    lim1 = 1.0 / jnp.sqrt(input_dim)
    lim2 = 1.0 / jnp.sqrt(hidden)
    w1 = jax.random.uniform(k1, (input_dim, hidden), jnp.float32, -lim1, lim1)
    b1 = jax.random.uniform(k2, (1, hidden), jnp.float32, -lim1, lim1)
    w2 = jax.random.uniform(k3, (hidden, num_classes), jnp.float32, -lim2, lim2)
    b2 = jax.random.uniform(k4, (1, num_classes), jnp.float32, -lim2, lim2)
    return w1, b1, w2, b2


if __name__ == "__main__":
    key = jax.random.PRNGKey(0)
    kx, kp = jax.random.split(key)

    # Demo shape: input_dim=384 per the module default. Note: with S=64 the
    # spatial axis pads to one 128-wide lane tile, so benchmark numbers at
    # this toy shape are dominated by step overhead, not kernel throughput.
    B, C, H, W = 2, 384, 8, 8
    num_classes = 20
    x = jax.random.normal(kx, (B, C, H, W), jnp.float32)
    w1, b1, w2, b2 = init_params(kp, input_dim=C, hidden=128,
                                 num_classes=num_classes)

    # Pure-JAX reference matching the PyTorch forward exactly.
    x_nhwc = jnp.transpose(x, (0, 2, 3, 1)).reshape(B * H * W, C)
    ref = jnp.maximum(x_nhwc @ w1 + b1, 0.0) @ w2 + b2
    ref = jnp.transpose(ref.reshape(B, H, W, num_classes), (0, 3, 1, 2))

    # f32 datapath: tight check.
    out_f32 = jax.block_until_ready(
        simple_mlp_forward(x, w1, b1, w2, b2, compute_dtype=jnp.float32))
    assert out_f32.shape == (B, num_classes, H, W)
    assert jnp.allclose(out_f32, ref, atol=1e-3, rtol=1e-3)

    # bf16 datapath (default, bandwidth-optimized): looser tolerance.
    out_bf16 = jax.block_until_ready(simple_mlp_forward(x, w1, b1, w2, b2))
    assert out_bf16.shape == (B, num_classes, H, W)
    assert jnp.allclose(out_bf16, ref, atol=5e-2, rtol=5e-2)

    print("KERNEL_OK")
</pallas_src>

<mosaic_0001>
module attributes {stable_mosaic.version = 11 : i64} {
  func.func @mlp_kernel(%arg0: i32, %arg1: i32, %arg2: memref<1x384x128xf32, #tpu.memory_space<vmem>>, %arg3: memref<128x384xf32, #tpu.memory_space<vmem>>, %arg4: memref<128x1xf32, #tpu.memory_space<vmem>>, %arg5: memref<20x128xf32, #tpu.memory_space<vmem>>, %arg6: memref<20x1xf32, #tpu.memory_space<vmem>>, %arg7: memref<1x20x128xf32, #tpu.memory_space<vmem>>) attributes {dimension_semantics = [#tpu.dimension_semantics<parallel>, #tpu.dimension_semantics<parallel>], iteration_bounds = array<i64: 2, 1>, scalar_prefetch = 0 : i64, scratch_operands = 0 : i64, tpu.core_type = #tpu.core_type<tc>, window_params = [{transform_indices = @transform_0, window_bounds = array<i64: 1, 384, 128>}, {pipeline_mode = #tpu.pipeline_mode<synchronous>, transform_indices = @transform_1, window_bounds = array<i64: 128, 384>}, {pipeline_mode = #tpu.pipeline_mode<synchronous>, transform_indices = @transform_2, window_bounds = array<i64: 128, 1>}, {pipeline_mode = #tpu.pipeline_mode<synchronous>, transform_indices = @transform_3, window_bounds = array<i64: 20, 128>}, {pipeline_mode = #tpu.pipeline_mode<synchronous>, transform_indices = @transform_4, window_bounds = array<i64: 20, 1>}, {transform_indices = @transform_5, window_bounds = array<i64: 1, 20, 128>}]} {
    %c0 = arith.constant 0 : index
    %c0_0 = arith.constant 0 : index
    %c0_1 = arith.constant 0 : index
    %0 = vector.load %arg2[%c0, %c0_0, %c0_1] : memref<1x384x128xf32, #tpu.memory_space<vmem>>, vector<1x384x128xf32>
    %1 = vector.shape_cast %0 : vector<1x384x128xf32> to vector<384x128xf32>
    %c0_2 = arith.constant 0 : index
    %c0_3 = arith.constant 0 : index
    %2 = vector.load %arg3[%c0_2, %c0_3] : memref<128x384xf32, #tpu.memory_space<vmem>>, vector<128x384xf32>
    %cst = arith.constant dense<0.000000e+00> : vector<128x128xf32>
    %3 = tpu.matmul %2, %1, %cst {dimension_numbers = #tpu.dot_dimension_numbers<[1], [0], [0], [1], [0, 0, 1, 1], [], []>} : vector<128x384xf32>, vector<384x128xf32>, vector<128x128xf32> -> vector<128x128xf32>
    %c0_4 = arith.constant 0 : index
    %c0_5 = arith.constant 0 : index
    %4 = vector.load %arg4[%c0_4, %c0_5] : memref<128x1xf32, #tpu.memory_space<vmem>>, vector<128x1xf32>
    %5 = vector.broadcast %4 : vector<128x1xf32> to vector<128x128xf32>
    %6 = arith.addf %3, %5 : vector<128x128xf32>
    %cst_6 = arith.constant 0.000000e+00 : f32
    %7 = vector.broadcast %cst_6 : f32 to vector<128x128xf32>
    %8 = arith.maximumf %6, %7 : vector<128x128xf32>
    %c0_7 = arith.constant 0 : index
    %c0_8 = arith.constant 0 : index
    %9 = vector.load %arg5[%c0_7, %c0_8] : memref<20x128xf32, #tpu.memory_space<vmem>>, vector<20x128xf32>
    %cst_9 = arith.constant dense<0.000000e+00> : vector<20x128xf32>
    %10 = tpu.matmul %9, %8, %cst_9 {dimension_numbers = #tpu.dot_dimension_numbers<[1], [0], [0], [1], [0, 0, 1, 1], [], []>} : vector<20x128xf32>, vector<128x128xf32>, vector<20x128xf32> -> vector<20x128xf32>
    %c0_10 = arith.constant 0 : index
    %c0_11 = arith.constant 0 : index
    %11 = vector.load %arg6[%c0_10, %c0_11] : memref<20x1xf32, #tpu.memory_space<vmem>>, vector<20x1xf32>
    %12 = vector.broadcast %11 : vector<20x1xf32> to vector<20x128xf32>
    %13 = arith.addf %10, %12 : vector<20x128xf32>
    %c0_12 = arith.constant 0 : index
    %c0_13 = arith.constant 0 : index
    %c0_14 = arith.constant 0 : index
    %14 = vector.load %arg7[%c0_12, %c0_13, %c0_14] : memref<1x20x128xf32, #tpu.memory_space<vmem>>, vector<1x20x128xf32>
    %15 = vector.shape_cast %14 : vector<1x20x128xf32> to vector<20x128xf32>
    %16 = vector.shape_cast %13 : vector<20x128xf32> to vector<1x20x128xf32>
    tpu.vector_store %arg7[%c0_12, %c0_13, %c0_14], %16 {strides = array<i32>} : memref<1x20x128xf32, #tpu.memory_space<vmem>>, vector<1x20x128xf32>,
    return
  }
  func.func @transform_0(%arg0: i32, %arg1: i32) -> (i32, i32, i32) {
    %c0_i32 = arith.constant 0 : i32
    %c0_i32_0 = arith.constant 0 : i32
    return %arg0, %c0_i32, %arg1 : i32, i32, i32
  }
  func.func @transform_1(%arg0: i32, %arg1: i32) -> (i32, i32) {
    %c0_i32 = arith.constant 0 : i32
    %c0_i32_0 = arith.constant 0 : i32
    %c0_i32_1 = arith.constant 0 : i32
    return %c0_i32, %c0_i32_0 : i32, i32
  }
  func.func @transform_2(%arg0: i32, %arg1: i32) -> (i32, i32) {
    %c0_i32 = arith.constant 0 : i32
    %c0_i32_0 = arith.constant 0 : i32
    %c0_i32_1 = arith.constant 0 : i32
    return %c0_i32, %c0_i32_0 : i32, i32
  }
  func.func @transform_3(%arg0: i32, %arg1: i32) -> (i32, i32) {
    %c0_i32 = arith.constant 0 : i32
    %c0_i32_0 = arith.constant 0 : i32
    %c0_i32_1 = arith.constant 0 : i32
    return %c0_i32, %c0_i32_0 : i32, i32
  }
  func.func @transform_4(%arg0: i32, %arg1: i32) -> (i32, i32) {
    %c0_i32 = arith.constant 0 : i32
    %c0_i32_0 = arith.constant 0 : i32
    %c0_i32_1 = arith.constant 0 : i32
    return %c0_i32, %c0_i32_0 : i32, i32
  }
  func.func @transform_5(%arg0: i32, %arg1: i32) -> (i32, i32, i32) {
    %c0_i32 = arith.constant 0 : i32
    %c0_i32_0 = arith.constant 0 : i32
    return %arg0, %c0_i32, %arg1 : i32, i32, i32
  }
}

</mosaic_0001>

<bundles_post_ra>
// kernel: tpu_custom_call.1
= control target key start
LH: loop header
LB: loop body
LE: loop exit
PB: predicated region body
PF: predicated region fallthrough
CT: control target
= control target key end

     0   :  { %10 = vsyncpa [#allocation3], 0  ;;  %s1847_s0 = inlined_call_operand.hbm [shape: f32[2,384,128], index: 0, kind: input, shape index: {}]   ;;  %s1848_s1 = inlined_call_operand.hbm [shape: f32[128,384], index: 1, kind: input, shape index: {}]   ;;  %s1849_s2 = inlined_call_operand.vmem [shape: f32[128,1], index: 2, kind: input, shape index: {}]   ;;  %s1850_s3 = inlined_call_operand.vmem [shape: f32[20,128], index: 3, kind: input, shape index: {}]   ;;  %s1851_s4 = inlined_call_operand.vmem [shape: f32[20,1], index: 4, kind: input, shape index: {}]   ;;  %s1852_s5 = inlined_call_operand.vmem [shape: f32[2,20,128], index: 5, kind: output, shape index: {}]  }
   0x1   :  { %12 = vsyncpa [#allocation3 + $0x1], 0 }
   0x2   :  { %13 = vsyncpa [#allocation5], 0  ;;  %s1547_s18 = smov 0   ;;  %s1549_s19 = smov 0  }
   0x3   :  { %s1551_s20 = smov 0   ;;  %s1553_s21 = smov 0  }
   0x4   :  { %s1555_s22 = smov 0   ;;  %s1557_s23 = smov 0  }
   0x5 LB: > { %s986_s24 = sadd.s32 4294967295, %s1505_s23   ;;  %p53_p0 = scmp.ne.s32.totalorder %s1489_s19, %s1485_s18  ;;  %s1505_s23 = sphi %s1557_s23, %s19_s23   ;;  %s1501_s22 = sphi %s1555_s22, %s1869_s22   ;;  %s1497_s21 = sphi %s1553_s21, %s1868_s21   ;;  %s1493_s20 = sphi %s1551_s20, %s1867_s20   ;;  %s1489_s19 = sphi %s1549_s19, %s1866_s19   ;;  %s1485_s18 = sphi %s1547_s18, %s1865_s18  }
   0x6   : > { %p1577_p1 = scmp.eq.s32.totalorder %s986_s24, 0  ;;  %p988_p2 = scmp.ge.s32.totalorder %s1505_s23, 1 }
   0x7   : > { %p176_p3 = scmp.lt.s32.totalorder %s1505_s23, 3  ;;  %s1507_s28 = smov [#allocation4]  }
   0x8   : > { %s1857_s25 = scalar_select %p1577_p1, 1, 0 }
   0x9   : > { %p1585_p4 = por %p1577_p1, %p53_p0  ;;  %p1589_p5 = pnand %p988_p2, %p176_p3 }
   0xa   : > { %s188_s29 = sshll.u32 %s1507_s28, 4  ;;  %s31_s6 = sadd.s32 1, %s1501_s22  ;;  %s189_s29 = int_to_ptr.vmem [resolvable:$true] %s188_s29 }
   0xb   : > { %s1858_s26 = scalar_select %p1585_p4, 1, 0 }
   0xc   : > { %s1859_s27 = scalar_select %p1589_p5, 1, 0 }
   0xd   : > { %p1323_p6 = pneg %p1589_p5  ;;  %s1393_s9 = scalar_lea.hbm %s1848_s1, 6144 }
   0xe   : > { %p1394_p8 = scmp.ne.s32.totalorder %s1848_s1, %s1393_s9  ;;  %p1400_p12 = scmp.lt.u32.totalorder %s1393_s9, %s1848_s1 }
   0xf   : > { %p1597_p7 = pnand %p1323_p6, %p1577_p1 }
  0x11   : > { %p1395_p9 = pneg %p1597_p7 }
  0x13   : > { %p1396_p10 = pnand %p1395_p9, %p1394_p8 }
  0x15   : > { %p1397_p11 = pneg %p1396_p10 }
  0x17   : > { %p1402_p13 = pnand %p1400_p12, %p1397_p11 }
  0x19   : > { %1405 = shalt.err (!%p1402_p13)
}
  0x1a   : > { %s1406_s14 = scalar_lea.vmem %s189_s29, 6144  ;;  %p1414_p6 = scmp.lt.s32.totalorder %s189_s29, %s189_s29 }
  0x1b   : > { %p1407_p0 = scmp.ne.s32.totalorder %s189_s29, %s1406_s14  ;;  %p1415_p1 = scmp.lt.s32.totalorder %s1406_s14, %s1406_s14 }
  0x1d   : > { %p1409_p2 = pnand %p1407_p0, %p1395_p9  ;;  %p1416_p4 = por %p1415_p1, %p1414_p6 }
  0x1f   : > { %p1410_p3 = pneg %p1409_p2 }
  0x21   : > { %p1417_p5 = pnand %p1416_p4, %p1410_p3 }
  0x23   : > { %1420 = shalt.err (!%p1417_p5)
}
  0x24   : > { %s1508_s15 = smov 384   ;;  %s1509_s16 = smov 24  }
  0x25   : > { %1326 = dma.hbm_to_vmem [thread:$0]  (!%p1597_p7), %s1848_s1, 6144, %s189_s29, [#allocation5], %s1508_s15, %s1508_s15, %s1509_s16  }
  0x26   : > { %p33_p1 = scmp.ge.s32.totalorder %s31_s6, 2  ;;  %s40_s24 = sadd.s32 1, %s1493_s20 }
  0x27   : > { %p47_p4 = scmp.ne.s32.totalorder %s1493_s20, %s1489_s19  ;;  %p48_p5 = scmp.eq.s32.totalorder %s1505_s23, 0 }
  0x28   : > { %s1871_s6 = smov (%p33_p1, %s31_s6), 0  ;;  %p1332_p9 = scmp.lt.s32.totalorder %s1505_s23, 2 }
  0x29   : > { %p49_p8 = por %p48_p5, %p47_p4  ;;  %s35_s28 = ssub.s32 %s1501_s22, %s1871_s6 }
  0x2a   : > { %s211_s7 = sand.u32 1, %s1493_s20   ;;  %p38_p10 = scmp.eq.s32.totalorder %s35_s28, 0 }
  0x2b   : > { %s1313_s8 = smul.u32 384, %s211_s7  ;;  %p1628_p11 = pnand %p1332_p9, %p49_p8 }
  0x2c   : > { %s1633_s29 = scalar_select %p38_p10, %s1493_s20, %s40_s24  }
  0x2d   : > { %s1314_s30 = smul.u32 6144, %s1501_s22  ;;  %s215_s10 = scalar_lea.vmem [#allocation2], %s1313_s8 }
  0x2e   : > { %s223_s11 = sshll.u32 %s215_s10, 4  ;;  %s1643_s15 = scalar_lea.sflag [#allocation3], %s211_s7  ;;  %s1641_s11 = int_to_ptr.vmem [resolvable:$true] %s223_s11 }
  0x2f   : > { %s1639_s14 = scalar_lea.hbm %s1847_s0, %s1314_s30  ;;  %p1423_p12 = pneg %p1628_p11 }
  0x30   : > { %s1421_s16 = scalar_lea.hbm %s1639_s14, 6144  ;;  %s1426_s24 = scalar_lea.hbm %s1847_s0, 12288 }
  0x31   : > { %p1422_p7 = scmp.ne.s32.totalorder %s1639_s14, %s1421_s16  ;;  %p1427_p2 = scmp.lt.u32.totalorder %s1639_s14, %s1847_s0 }
  0x32   : > { %p1428_p3 = scmp.lt.u32.totalorder %s1426_s24, %s1421_s16  ;;  %p1430_p1 = scmp.lt.u32.totalorder %s1421_s16, %s1639_s14 }
  0x33   : > { %p1424_p13 = pnand %p1423_p12, %p1422_p7 }
  0x34   : > { %p1429_p6 = por %p1428_p3, %p1427_p2 }
  0x35   : > { %p1425_p0 = pneg %p1424_p13 }
  0x36   : > { %p1431_p4 = por %p1430_p1, %p1429_p6 }
  0x38   : > { %p1432_p5 = pnand %p1431_p4, %p1425_p0 }
  0x3a   : > { %1435 = shalt.err (!%p1432_p5)
}
  0x3b   : > { %s1436_s7 = scalar_lea.vmem %s1641_s11, 6144  ;;  %s1510_s30 = smov [#allocation2]  }
  0x3c   : > { %p1437_p8 = scmp.ne.s32.totalorder %s1641_s11, %s1436_s7  ;;  %s1441_s10 = sshll.u32 %s1510_s30, 4  ;;  %s1442_s10 = int_to_ptr.vmem [resolvable:$false] %s1441_s10 }
  0x3d   : > { %s1443_s12 = scalar_lea.vmem %s1442_s10, 12288  ;;  %p1444_p7 = scmp.lt.s32.totalorder %s1641_s11, %s1442_s10 }
  0x3e   : > { %p1439_p9 = pnand %p1437_p8, %p1423_p12  ;;  %p1445_p13 = scmp.lt.s32.totalorder %s1443_s12, %s1436_s7 }
  0x40   : > { %p1440_p10 = pneg %p1439_p9  ;;  %p1446_p2 = por %p1445_p13, %p1444_p7 }
  0x42   : > { %p1447_p3 = pnand %p1446_p2, %p1440_p10 }
  0x44   : > { %1450 = shalt.err (!%p1447_p3)
}
  0x45   : > { %s1511_s13 = smov 128   ;;  %s1512_s16 = smov 8  }
  0x46   : > { %1330 = dma.hbm_to_vmem [thread:$0]  (!%p1628_p11), %s1639_s14, 6144, %s1641_s11, %s1643_s15, %s1511_s13, %s1511_s13, %s1512_s16  }
  0x47   : > { %p1862_p12 = scmp.ne.s32.totalorder %s1859_s27, 0 }
  0x48   : > { %s237_s17 = sand.u32 (!%p1862_p12), 1, %s1489_s19   ;;  %p1863_p0 = scmp.ne.s32.totalorder (!%p1862_p12), %s1858_s26, 0 }
  0x49   : > { %235 = sbr.rel (%p1862_p12) target bundleno = 628 (0x274), region = 40  ;;  %s238_s24 = scalar_lea.sflag (!%p1862_p12), [#allocation3], %s237_s17 }
  0x4a   : > { %s1315_s18 = smul.u32 (!%p1862_p12), 384, %s237_s17 }
  0x4c   : > { %s1674_s28 = scalar_lea.vmem (!%p1862_p12), [#allocation2], %s1315_s18 }
  0x50   : > { %1476 = dma.done.wait (%p1863_p0), %s238_s24, 6144  }
  0x51   : > { %1478 = vsyncadd (%p1863_p0), %s238_s24, 4294961152  ;;  %p1864_p6 = scmp.ne.s32.totalorder %s1857_s25, 0 }
  0x53   : > { %1480 = dma.done.wait (%p1864_p6), [#allocation5], 6144  }
  0x54   : > { %1482 = vsyncadd (%p1864_p6), [#allocation5], 4294961152  ;;  %v1513_v0 = vmov 0   ;;  %v299_v1 = vld [vmem:[%s1674_s28 + $0x80] sm:$0xff]  ;;  %v300_v2 = vld [vmem:[%s1674_s28 + $0x88] sm:$0xff]  ;;  %vm1515_vm0 = vmmov 0  }
  0x55   : > { %1391 = vset.pattern.permute.xlu0 %v1513_v0  ;;  %1392 = vset.pattern.permute.xlu1 %v1513_v0  ;;  %v283_v3 = vld [vmem:[%s1674_s28] sm:$0xff]  ;;  %v1225_v4 = vpack.c.bf16 %v300_v2, %v299_v1  ;;  %v284_v5 = vld [vmem:[%s1674_s28 + $0x8] sm:$0xff]  ;;  %v301_v6 = vld [vmem:[%s1674_s28 + $0x90] sm:$0xff]  ;;  %p275_p11 = scmp.lt.s32.totalorder %s1497_s21, 1 }
  0x56   : > { %v302_v7 = vld [vmem:[%s1674_s28 + $0x98] sm:$0xff]  ;;  %v1227_v8 = vpack.c.bf16 %v284_v5, %v283_v3  ;;  %v315_v10 = vld [vmem:[%s1674_s28 + $0x100] sm:$0xff]  ;;  %v316_v11 = vld [vmem:[%s1674_s28 + $0x108] sm:$0xff] }
  0x57   : > { %v1229_v9 = vpack.c.bf16 %v302_v7, %v301_v6  ;;  %v285_v12 = vld [vmem:[%s1674_s28 + $0x10] sm:$0xff]  ;;  %1226 = vmatprep.subr.bf16.mxu0 %v1225_v4  ;;  %v1257_v13 = vpack.c.bf16 %v316_v11, %v315_v10  ;;  %v286_v14 = vld [vmem:[%s1674_s28 + $0x18] sm:$0xff]  ;;  %v303_v15 = vld [vmem:[%s1674_s28 + $0xa0] sm:$0xff]  ;;  %s1873_s21 = smov (!%p275_p11, %s1497_s21), 1 }
  0x58   : > { %v304_v16 = vld [vmem:[%s1674_s28 + $0xa8] sm:$0xff]  ;;  %1228 = vmatpush3.bf16.msra.mxu0 %v1227_v8  ;;  %v1231_v17 = vpack.c.bf16 %v286_v14, %v285_v12  ;;  %v317_v18 = vld [vmem:[%s1674_s28 + $0x110] sm:$0xff]  ;;  %v318_v19 = vld [vmem:[%s1674_s28 + $0x118] sm:$0xff]  ;;  %s1316_s7 = smul.u32 24, %s1873_s21 }
  0x59   : > { %1230 = vmatprep.subr.bf16.mxu0 %v1229_v9  ;;  %1258 = vmatprep.subr.bf16.mxu1 %v1257_v13  ;;  %v1233_v20 = vpack.c.bf16 %v304_v16, %v303_v15  ;;  %v1261_v21 = vpack.c.bf16 %v318_v19, %v317_v18  ;;  %v287_v22 = vld [vmem:[%s1674_s28 + $0x20] sm:$0xff]  ;;  %v288_v23 = vld [vmem:[%s1674_s28 + $0x28] sm:$0xff]  ;;  %v305_v24 = vld [vmem:[%s1674_s28 + $0xb0] sm:$0xff] }
  0x5a   : > { %1260 = vmatpush3.bf16.msra.mxu1 %v1257_v13  ;;  %v306_v25 = vld [vmem:[%s1674_s28 + $0xb8] sm:$0xff]  ;;  %v319_v26 = vld [vmem:[%s1674_s28 + $0x120] sm:$0xff]  ;;  %v320_v27 = vld [vmem:[%s1674_s28 + $0x128] sm:$0xff]  ;;  %v1235_v29 = vpack.c.bf16 %v288_v23, %v287_v22  ;;  %s282_s12 = scalar_lea.vmem %s1852_s5, %s1316_s7 }
  0x5b   : > { %1262 = vmatprep.subr.bf16.mxu1 %v1261_v21  ;;  %v1265_v28 = vpack.c.bf16 %v320_v27, %v319_v26  ;;  %v321_v30 = vld [vmem:[%s1674_s28 + $0x130] sm:$0xff]  ;;  %v322_v31 = vld [vmem:[%s1674_s28 + $0x138] sm:$0xff]  ;;  %v1237_v32 = vpack.c.bf16 %v306_v25, %v305_v24  ;;  %v307_v35 = vld [vmem:[%s1674_s28 + $0xc0] sm:$0xff] }
  0x5c   : > { %1232 = vmatpush3.bf16.msra.mxu0 %v1231_v17  ;;  %v289_v33 = vld [vmem:[%s1674_s28 + $0x30] sm:$0xff]  ;;  %v290_v34 = vld [vmem:[%s1674_s28 + $0x38] sm:$0xff]  ;;  %v308_v36 = vld [vmem:[%s1674_s28 + $0xc8] sm:$0xff]  ;;  %v1269_v37 = vpack.c.bf16 %v322_v31, %v321_v30 }
  0x5d   : > { %1234 = vmatprep.subr.bf16.mxu0 %v1233_v20  ;;  %v1239_v38 = vpack.c.bf16 %v290_v34, %v289_v33  ;;  %v323_v39 = vld [vmem:[%s1674_s28 + $0x140] sm:$0xff]  ;;  %v324_v40 = vld [vmem:[%s1674_s28 + $0x148] sm:$0xff]  ;;  %v1241_v41 = vpack.c.bf16 %v308_v36, %v307_v35  ;;  %v309_v44 = vld [vmem:[%s1674_s28 + $0xd0] sm:$0xff] }
  0x5e   : > { %1264 = vmatpush3.bf16.msra.mxu1 %v1261_v21  ;;  %v291_v42 = vld [vmem:[%s1674_s28 + $0x40] sm:$0xff]  ;;  %v292_v43 = vld [vmem:[%s1674_s28 + $0x48] sm:$0xff]  ;;  %v310_v45 = vld [vmem:[%s1674_s28 + $0xd8] sm:$0xff]  ;;  %v1273_v46 = vpack.c.bf16 %v324_v40, %v323_v39 }
  0x5f   : > { %1266 = vmatprep.subr.bf16.mxu1 %v1265_v28  ;;  %v332_v47 = vld [vmem:[#allocation4 + $0x8] sm:$0xff]  ;;  %v1243_v48 = vpack.c.bf16 %v292_v43, %v291_v42  ;;  %v325_v49 = vld [vmem:[%s1674_s28 + $0x150] sm:$0xff]  ;;  %v326_v50 = vld [vmem:[%s1674_s28 + $0x158] sm:$0xff]  ;;  %v1245_v51 = vpack.c.bf16 %v310_v45, %v309_v44 }
  0x60   : > { %1236 = vmatpush3.bf16.msra.mxu0 %v1235_v29  ;;  %539 = vmatprep.mubr.f32.mxu0 %v332_v47  ;;  %v293_v52 = vld [vmem:[%s1674_s28 + $0x50] sm:$0xff]  ;;  %v294_v53 = vld [vmem:[%s1674_s28 + $0x58] sm:$0xff]  ;;  %v311_v55 = vld [vmem:[%s1674_s28 + $0xe0] sm:$0xff]  ;;  %v1277_v57 = vpack.c.bf16 %v326_v50, %v325_v49 }
  0x61   : > { %1238 = vmatprep.subr.bf16.mxu0 %v1237_v32  ;;  %v333_v54 = vld [vmem:[#allocation4 + $0x10] sm:$0xff]  ;;  %v312_v56 = vld [vmem:[%s1674_s28 + $0xe8] sm:$0xff]  ;;  %v1247_v58 = vpack.c.bf16 %v294_v53, %v293_v52  ;;  %v327_v59 = vld [vmem:[%s1674_s28 + $0x160] sm:$0xff] }
  0x62   : > { %1268 = vmatpush3.bf16.msra.mxu1 %v1265_v28  ;;  %1160 = vmatprep.mubr.f32.mxu1 %v333_v54  ;;  %v328_v60 = vld [vmem:[%s1674_s28 + $0x168] sm:$0xff]  ;;  %v1249_v61 = vpack.c.bf16 %v312_v56, %v311_v55  ;;  %v295_v62 = vld [vmem:[%s1674_s28 + $0x60] sm:$0xff]  ;;  %v313_v0 = vld [vmem:[%s1674_s28 + $0xf0] sm:$0xff] }
  0x63   : > { %1270 = vmatprep.subr.bf16.mxu1 %v1269_v37  ;;  %v296_v63 = vld [vmem:[%s1674_s28 + $0x68] sm:$0xff]  ;;  %v314_v1 = vld [vmem:[%s1674_s28 + $0xf8] sm:$0xff]  ;;  %v1281_v2 = vpack.c.bf16 %v328_v60, %v327_v59  ;;  %v329_v4 = vld [vmem:[%s1674_s28 + $0x170] sm:$0xff] }
  0x64   : > { %1240 = vmatpush3.bf16.msra.mxu0 %v1239_v38  ;;  %v1251_v3 = vpack.c.bf16 %v296_v63, %v295_v62  ;;  %v330_v5 = vld [vmem:[%s1674_s28 + $0x178] sm:$0xff]  ;;  %v1253_v6 = vpack.c.bf16 %v314_v1, %v313_v0  ;;  %v297_v7 = vld [vmem:[%s1674_s28 + $0x70] sm:$0xff]  ;;  %v331_v11 = vld [vmem:[#allocation4] sm:$0xff] }
  0x65   : > { %1242 = vmatprep.subr.bf16.mxu0 %v1241_v41  ;;  %v298_v8 = vld [vmem:[%s1674_s28 + $0x78] sm:$0xff]  ;;  %v1285_v9 = vpack.c.bf16 %v330_v5, %v329_v4  ;;  %v379_v12 = vld [vmem:[%s1849_s2] sm:$0xff]  ;;  %v381_v13 = vld [vmem:[%s1849_s2 + $0x10] sm:$0xff] }
  0x66   : > { %1272 = vmatpush3.bf16.msra.mxu1 %v1269_v37  ;;  %v1255_v10 = vpack.c.bf16 %v298_v8, %v297_v7  ;;  %v335_v14 = vld [vmem:[#allocation4 + $0x20] sm:$0xff]  ;;  %397 = vperm.xlu0 %1391, %v379_v12   ;;  %v336_v15 = vld [vmem:[#allocation4 + $0x28] sm:$0xff]  ;;  %v382_v18 = vld [vmem:[%s1849_s2 + $0x18] sm:$0xff]  ;;  %v1514_v12 = vmov 0.0|0.0  }
  0x67   : > { %1274 = vmatprep.subr.bf16.mxu1 %v1273_v46  ;;  %407 = vperm.xlu1 %1392, %v381_v13   ;;  %v380_v16 = vld [vmem:[%s1849_s2 + $0x8] sm:$0xff]  ;;  %v339_v17 = vld [vmem:[#allocation4 + $0x40] sm:$0xff]  ;;  %v334_v19 = vld [vmem:[#allocation4 + $0x18] sm:$0xff]  ;;  %v1516_v13 = vmov 0.0  }
  0x68   : > { %1244 = vmatpush3.bf16.msra.mxu0 %v1243_v48  ;;  %v338_v20 = vld [vmem:[#allocation4 + $0x38] sm:$0xff]  ;;  %v383_v22 = vld [vmem:[%s1849_s2 + $0x20] sm:$0xff]  ;;  %v345_v23 = vld [vmem:[#allocation4 + $0x70] sm:$0xff] }
  0x69   : > { %1246 = vmatprep.subr.bf16.mxu0 %v1245_v51  ;;  %v342_v21 = vld [vmem:[#allocation4 + $0x58] sm:$0xff]  ;;  %v384_v24 = vld [vmem:[%s1849_s2 + $0x28] sm:$0xff]  ;;  %v337_v25 = vld [vmem:[#allocation4 + $0x30] sm:$0xff] }
  0x6a   : > { %1276 = vmatpush3.bf16.msra.mxu1 %v1273_v46  ;;  %402 = vperm.xlu0 %1391, %v380_v16   ;;  %v341_v26 = vld [vmem:[#allocation4 + $0x50] sm:$0xff]  ;;  %v348_v27 = vld [vmem:[#allocation4 + $0x88] sm:$0xff]  ;;  %v351_v29 = vld [vmem:[#allocation4 + $0xa0] sm:$0xff] }
  0x6b   : > { %1278 = vmatprep.subr.bf16.mxu1 %v1277_v57  ;;  %412 = vperm.xlu1 %1392, %v382_v18   ;;  %v385_v28 = vld [vmem:[%s1849_s2 + $0x30] sm:$0xff]  ;;  %v386_v30 = vld [vmem:[%s1849_s2 + $0x38] sm:$0xff]  ;;  %v340_v31 = vld [vmem:[#allocation4 + $0x48] sm:$0xff] }
  0x6c   : > { %1248 = vmatpush3.bf16.msra.mxu0 %v1247_v58  ;;  %v344_v32 = vld [vmem:[#allocation4 + $0x68] sm:$0xff]  ;;  %v354_v33 = vld [vmem:[#allocation4 + $0xb8] sm:$0xff]  ;;  %v387_v34 = vld [vmem:[%s1849_s2 + $0x40] sm:$0xff] }
  0x6d   : > { %1250 = vmatprep.subr.bf16.mxu0 %v1249_v61  ;;  %v357_v35 = vld [vmem:[#allocation4 + $0xd0] sm:$0xff]  ;;  %v388_v36 = vld [vmem:[%s1849_s2 + $0x48] sm:$0xff]  ;;  %v343_v37 = vld [vmem:[#allocation4 + $0x60] sm:$0xff] }
  0x6e   : > { %1280 = vmatpush3.bf16.msra.mxu1 %v1277_v57  ;;  %417 = vperm.xlu0 %1391, %v383_v22   ;;  %v347_v38 = vld [vmem:[#allocation4 + $0x80] sm:$0xff]  ;;  %v360_v39 = vld [vmem:[#allocation4 + $0xe8] sm:$0xff]  ;;  %v389_v40 = vld [vmem:[%s1849_s2 + $0x50] sm:$0xff] }
  0x6f   : > { %1282 = vmatprep.subr.bf16.mxu1 %v1281_v2  ;;  %422 = vperm.xlu1 %1392, %v384_v24   ;;  %v363_v41 = vld [vmem:[#allocation4 + $0x100] sm:$0xff]  ;;  %v390_v42 = vld [vmem:[%s1849_s2 + $0x58] sm:$0xff]  ;;  %v369_v47 = vld [vmem:[#allocation4 + $0x130] sm:$0xff] }
  0x70   : > { %1252 = vmatpush3.bf16.msra.mxu0 %v1251_v3  ;;  %v346_v43 = vld [vmem:[#allocation4 + $0x78] sm:$0xff]  ;;  %v391_v46 = vld [vmem:[%s1849_s2 + $0x60] sm:$0xff]  ;;  %v392_v48 = vld [vmem:[%s1849_s2 + $0x68] sm:$0xff] }
  0x71   : > { %1254 = vmatprep.subr.bf16.mxu0 %v1253_v6  ;;  %v350_v44 = vld [vmem:[#allocation4 + $0x98] sm:$0xff]  ;;  %v349_v49 = vld [vmem:[#allocation4 + $0x90] sm:$0xff]  ;;  %v372_v51 = vld [vmem:[#allocation4 + $0x148] sm:$0xff] }
  0x72   : > { %1284 = vmatpush3.bf16.msra.mxu1 %v1281_v2  ;;  %427 = vperm.xlu0 %1391, %v385_v28   ;;  %v366_v45 = vld [vmem:[#allocation4 + $0x118] sm:$0xff]  ;;  %v353_v50 = vld [vmem:[#allocation4 + $0xb0] sm:$0xff]  ;;  %v375_v53 = vld [vmem:[#allocation4 + $0x160] sm:$0xff] }
  0x73   : > { %1286 = vmatprep.subr.bf16.mxu1 %v1285_v9  ;;  %432 = vperm.xlu1 %1392, %v386_v30   ;;  %v393_v52 = vld [vmem:[%s1849_s2 + $0x70] sm:$0xff]  ;;  %v394_v54 = vld [vmem:[%s1849_s2 + $0x78] sm:$0xff]  ;;  %v352_v55 = vld [vmem:[#allocation4 + $0xa8] sm:$0xff] }
  0x74   : > { %1256 = vmatpush3.bf16.msra.mxu0 %v1255_v10  ;;  %v356_v56 = vld [vmem:[#allocation4 + $0xc8] sm:$0xff]  ;;  %v378_v57 = vld [vmem:[#allocation4 + $0x178] sm:$0xff]  ;;  %v784_v58 = vld [vmem:[%s1851_s4] sm:$0xff] }
  0x75   : > { %v785_v59 = vld [vmem:[%s1851_s4 + $0x8] sm:$0xff]  ;;  %v355_v60 = vld [vmem:[#allocation4 + $0xc0] sm:$0xff]  ;;  %v786_v62 = vld [vmem:[%s1851_s4 + $0x10] sm:$0xf] }
  0x76   : > { %1288 = vmatpush3.bf16.msra.mxu1 %v1285_v9  ;;  %437 = vperm.xlu0 %1391, %v387_v34   ;;  %v359_v61 = vld [vmem:[#allocation4 + $0xe0] sm:$0xff]  ;;  %v358_v63 = vld [vmem:[#allocation4 + $0xd8] sm:$0xff]  ;;  %v361_v1 = vld [vmem:[#allocation4 + $0xf0] sm:$0xff] }
  0x77   : > { %540 = vmatmul.mubr.f32.vlgmr.msra.gmra.mrb[0].mxu0 %v331_v11  ;;  %442 = vperm.xlu1 %1392, %v388_v36   ;;  %v362_v0 = vld [vmem:[#allocation4 + $0xf8] sm:$0xff]  ;;  %v365_v2 = vld [vmem:[#allocation4 + $0x110] sm:$0xff]  ;;  %v364_v3 = vld [vmem:[#allocation4 + $0x108] sm:$0xff] }
  0x78   : > { %544 = vmatprep.mubr.f32.mxu0 %v335_v14  ;;  %v368_v4 = vld [vmem:[#allocation4 + $0x128] sm:$0xff]  ;;  %v367_v5 = vld [vmem:[#allocation4 + $0x120] sm:$0xff]  ;;  %v370_v7 = vld [vmem:[#allocation4 + $0x138] sm:$0xff]  ;;  %1289 = vmatprep.subr.bf16.mxu1 %v1514_v12 }
  0x79   : > { %1161 = vmatmul.mubr.f32.vlgmr.msra.gmra.mrb[0].mxu1 %v336_v15  ;;  %v371_v6 = vld [vmem:[#allocation4 + $0x140] sm:$0xff]  ;;  %v374_v8 = vld [vmem:[#allocation4 + $0x158] sm:$0xff]  ;;  %v373_v9 = vld [vmem:[#allocation4 + $0x150] sm:$0xff] }
  0x7a   : > { %1163 = vmatprep.mubr.f32.mxu1 %v339_v17  ;;  %447 = vperm.xlu0 %1391, %v389_v40   ;;  %v377_v10 = vld [vmem:[#allocation4 + $0x170] sm:$0xff]  ;;  %v376_v11 = vld [vmem:[#allocation4 + $0x168] sm:$0xff] }
  0x7b   : > { %545 = vmatmul.mubr.f32.gmra.mrb[2].mxu0 %v334_v19  ;;  %452 = vperm.xlu1 %1392, %v390_v42  }
  0x7c   : > { %549 = vmatprep.mubr.f32.mxu0 %v338_v20 }
  0x7d   : > { %1164 = vmatmul.mubr.f32.gmra.mrb[2].mxu1 %v342_v21 }
  0x7e   : > { %1166 = vmatprep.mubr.f32.mxu1 %v345_v23  ;;  %457 = vperm.xlu0 %1391, %v391_v46  }
  0x7f   : > { %550 = vmatmul.mubr.f32.gmra.mrb[4].mxu0 %v337_v25  ;;  %462 = vperm.xlu1 %1392, %v392_v48  }
  0x80   : > { %554 = vmatprep.mubr.f32.mxu0 %v341_v26 }
  0x81   : > { %1167 = vmatmul.mubr.f32.gmra.mrb[4].mxu1 %v348_v27 }
  0x82   : > { %1169 = vmatprep.mubr.f32.mxu1 %v351_v29  ;;  %467 = vperm.xlu0 %1391, %v393_v52  }
  0x83   : > { %555 = vmatmul.mubr.f32.gmra.mrb[6].mxu0 %v340_v31  ;;  %472 = vperm.xlu1 %1392, %v394_v54  }
  0x84   : > { %559 = vmatprep.mubr.f32.mxu0 %v344_v32 }
  0x85   : > { %1170 = vmatmul.mubr.f32.gmra.mrb[6].mxu1 %v354_v33 }
  0x86   : > { %1172 = vmatprep.mubr.f32.mxu1 %v357_v35  ;;  %789 = vperm.xlu0 %1391, %v784_v58  }
  0x87   : > { %560 = vmatmul.mubr.f32.gmra.mrb[8].mxu0 %v343_v37  ;;  %794 = vperm.xlu1 %1392, %v785_v59  }
  0x88   : > { %564 = vmatprep.mubr.f32.mxu0 %v347_v38 }
  0x89   : > { %1173 = vmatmul.mubr.f32.gmra.mrb[8].mxu1 %v360_v39 }
  0x8a   : > { %1175 = vmatprep.mubr.f32.mxu1 %v363_v41  ;;  %799 = vperm.xlu0 %1391, %v786_v62  }
  0x8b   : > { %565 = vmatmul.mubr.f32.gmra.mrb[10].mxu0 %v346_v43 }
  0x8c   : > { %569 = vmatprep.mubr.f32.mxu0 %v350_v44 }
  0x8d   : > { %1176 = vmatmul.mubr.f32.gmra.mrb[10].mxu1 %v366_v45 }
  0x8e   : > { %1178 = vmatprep.mubr.f32.mxu1 %v369_v47 }
  0x8f   : > { %570 = vmatmul.mubr.f32.gmra.mrb[12].mxu0 %v349_v49 }
  0x90   : > { %574 = vmatprep.mubr.f32.mxu0 %v353_v50 }
  0x91   : > { %1179 = vmatmul.mubr.f32.gmra.mrb[12].mxu1 %v372_v51 }
  0x92   : > { %1181 = vmatprep.mubr.f32.mxu1 %v375_v53 }
  0x93   : > { %575 = vmatmul.mubr.f32.gmra.mrb[14].mxu0 %v352_v55 }
  0x94   : > { %579 = vmatprep.mubr.f32.mxu0 %v356_v56 }
  0x95   : > { %1182 = vmatmul.mubr.f32.gmra.mrb[14].mxu1 %v378_v57 }
  0x96   : > { %1216 = vmatprep.mubr.msk.f32.mxu1 %vm1515_vm0, %v1516_v13 }
  0x97   : > { %580 = vmatmul.mubr.f32.gmra.mrb[16].mxu0 %v355_v60 }
  0x98   : > { %584 = vmatprep.mubr.f32.mxu0 %v359_v61 }
  0x9b   : > { %585 = vmatmul.mubr.f32.gmra.mrb[18].mxu0 %v358_v63 }
  0x9c   : > { %589 = vmatprep.mubr.f32.mxu0 %v362_v0 }
  0x9f   : > { %590 = vmatmul.mubr.f32.gmra.mrb[20].mxu0 %v361_v1 }
  0xa0   : > { %594 = vmatprep.mubr.f32.mxu0 %v365_v2 }
  0xa3   : > { %595 = vmatmul.mubr.f32.gmra.mrb[22].mxu0 %v364_v3 }
  0xa4   : > { %599 = vmatprep.mubr.f32.mxu0 %v368_v4 }
  0xa7   : > { %600 = vmatmul.mubr.f32.gmra.mrb[24].mxu0 %v367_v5 }
  0xa8   : > { %604 = vmatprep.mubr.f32.mxu0 %v371_v6 }
  0xab   : > { %605 = vmatmul.mubr.f32.gmra.mrb[26].mxu0 %v370_v7 }
  0xac   : > { %609 = vmatprep.mubr.f32.mxu0 %v374_v8 }
  0xaf   : > { %610 = vmatmul.mubr.f32.gmra.mrb[28].mxu0 %v373_v9 }
  0xb0   : > { %614 = vmatprep.mubr.f32.mxu0 %v377_v10 }
  0xb3   : > { %615 = vmatmul.mubr.f32.gmra.mrb[30].mxu0 %v376_v11 }
  0xe5   : > { %v398_v15 = vpop.permute.xlu0 %397 }
  0xe6   : > { %v408_v30 = vpop.permute.xlu1 %407 }
  0xe9   : > { %v403_v26 = vpop.permute.xlu0 %402 }
  0xea   : > { %v413_v45 = vpop.permute.xlu1 %412 }
  0xed   : > { %v418_v53 = vpop.permute.xlu0 %417 }
  0xee   : > { %v423_v0 = vpop.permute.xlu1 %422 }
  0xf1   : > { %v428_v8 = vpop.permute.xlu0 %427 }
 0x14a   : > { %v1029_v14 = vpop.f32.mrb[0].mxu0 }
 0x14b   : > { %v1030_v16 = vpop.f32.mrb[1].mxu0 }
 0x14c   : > { %v1031_v17 = vadd.f32 %v1030_v16, %v1029_v14  ;;  %v1162_v18 = vpop.f32.mrb[0].mxu1 }
 0x14d   : > { %v686_v19 = vpop.f32.mrb[1].mxu1 }
 0x14e   : > { %v1032_v20 = vpop.f32.mrb[2].mxu0  ;;  %v542_v21 = vadd.f32 %v1031_v17, %v398_v15 }
 0x14f   : > { %v1033_v22 = vpop.f32.mrb[3].mxu0 }
 0x150   : > { %v1034_v23 = vadd.f32 %v1033_v22, %v1032_v20  ;;  %v687_v24 = vadd.f32 %v686_v19, %v542_v21  ;;  %v1165_v25 = vpop.f32.mrb[2].mxu1  ;;  %v433_v21 = vpop.permute.xlu1 %432 }
 0x151   : > { %v696_v27 = vpop.f32.mrb[3].mxu1 }
 0x152   : > { %v547_v28 = vadd.f32 %v1034_v23, %v403_v26  ;;  %v1035_v29 = vpop.f32.mrb[4].mxu0  ;;  %v765_v36 = vmax.f32 %v687_v24, 0.0 }
 0x153   : > { %v1036_v31 = vpop.f32.mrb[5].mxu0 }
 0x154   : > { %v692_v32 = vadd.f32 %v1162_v18, %v547_v28  ;;  %v1037_v33 = vadd.f32 %v1036_v31, %v1035_v29  ;;  %v1168_v34 = vpop.f32.mrb[4].mxu1  ;;  %v438_v28 = vpop.permute.xlu0 %437 }
 0x155   : > { %v706_v35 = vpop.f32.mrb[5].mxu1 }
 0x156   : > { %v766_v37 = vmax.f32 %v692_v32, 0.0  ;;  %v1038_v38 = vpop.f32.mrb[6].mxu0  ;;  %v552_v39 = vadd.f32 %v1037_v33, %v408_v30 }
 0x157   : > { %v1039_v40 = vpop.f32.mrb[7].mxu0 }
 0x158   : > { %v1290_v41 = vpack.c.bf16 %v766_v37, %v765_v36  ;;  %v1040_v42 = vadd.f32 %v1039_v40, %v1038_v38  ;;  %v697_v43 = vadd.f32 %v696_v27, %v552_v39  ;;  %v1171_v44 = vpop.f32.mrb[6].mxu1  ;;  %v443_v37 = vpop.permute.xlu1 %442 }
 0x159   : > { %v716_v46 = vpop.f32.mrb[7].mxu1 }
 0x15a   : > { %v557_v47 = vadd.f32 %v1040_v42, %v413_v45  ;;  %v1041_v48 = vpop.f32.mrb[8].mxu0  ;;  %1291 = vmatpush3.bf16.msra.mxu1 %v1290_v41  ;;  %v767_v55 = vmax.f32 %v697_v43, 0.0  ;;  %v448_v43 = vpop.permute.xlu0 %447 }
 0x15b   : > { %v1042_v49 = vpop.f32.mrb[9].mxu0  ;;  %1292 = vmatprep.subr.bf16.mxu1 %v1514_v12 }
 0x15c   : > { %v702_v50 = vadd.f32 %v1165_v25, %v557_v47  ;;  %v1043_v51 = vadd.f32 %v1042_v49, %v1041_v48  ;;  %v1174_v52 = vpop.f32.mrb[8].mxu1 }
 0x15d   : > { %v726_v54 = vpop.f32.mrb[9].mxu1 }
 0x15e   : > { %v768_v56 = vmax.f32 %v702_v50, 0.0  ;;  %v1044_v57 = vpop.f32.mrb[10].mxu0  ;;  %v562_v58 = vadd.f32 %v1043_v51, %v418_v53  ;;  %v453_v53 = vpop.permute.xlu1 %452 }
 0x15f   : > { %v1045_v59 = vpop.f32.mrb[11].mxu0 }
 0x160   : > { %v1293_v60 = vpack.c.bf16 %v768_v56, %v767_v55  ;;  %v1046_v61 = vadd.f32 %v1045_v59, %v1044_v57  ;;  %v707_v62 = vadd.f32 %v706_v35, %v562_v58  ;;  %v1793_v63 = vpop.f32.mrb[10].mxu1  ;;  %v458_v58 = vpop.permute.xlu0 %457 }
 0x161   : > { %v736_v1 = vpop.f32.mrb[11].mxu1 }
 0x162   : > { %v567_v2 = vadd.f32 %v1046_v61, %v423_v0  ;;  %v1047_v3 = vpop.f32.mrb[12].mxu0  ;;  %1294 = vmatpush3.bf16.msra.mxu1 %v1293_v60  ;;  %v769_v10 = vmax.f32 %v707_v62, 0.0 }
 0x163   : > { %v1048_v4 = vpop.f32.mrb[13].mxu0  ;;  %1295 = vmatprep.subr.bf16.mxu1 %v1514_v12 }
 0x164   : > { %v712_v5 = vadd.f32 %v1168_v34, %v567_v2  ;;  %v1049_v6 = vadd.f32 %v1048_v4, %v1047_v3  ;;  %v1796_v7 = vpop.f32.mrb[12].mxu1 }
 0x165   : > { %v746_v9 = vpop.f32.mrb[13].mxu1 }
 0x166   : > { %v770_v11 = vmax.f32 %v712_v5, 0.0  ;;  %v1050_v14 = vpop.f32.mrb[14].mxu0  ;;  %v572_v15 = vadd.f32 %v1049_v6, %v428_v8 }
 0x167   : > { %v1051_v16 = vpop.f32.mrb[15].mxu0 }
 0x168   : > { %v1296_v17 = vpack.c.bf16 %v770_v11, %v769_v10  ;;  %v1052_v18 = vadd.f32 %v1051_v16, %v1050_v14  ;;  %v717_v19 = vadd.f32 %v716_v46, %v572_v15  ;;  %v1798_v20 = vpop.f32.mrb[14].mxu1  ;;  %v468_v11 = vpop.permute.xlu0 %467 }
 0x169   : > { %v1800_v22 = vpop.f32.mrb[15].mxu1 }
 0x16a   : > { %v577_v23 = vadd.f32 %v1052_v18, %v433_v21  ;;  %v1053_v24 = vpop.f32.mrb[16].mxu0  ;;  %1297 = vmatpush3.bf16.msra.mxu1 %v1296_v17  ;;  %v771_v29 = vmax.f32 %v717_v19, 0.0 }
 0x16b   : > { %v1054_v25 = vpop.f32.mrb[17].mxu0  ;;  %1298 = vmatprep.subr.bf16.mxu1 %v1514_v12 }
 0x16c   : > { %v722_v26 = vadd.f32 %v1171_v44, %v577_v23  ;;  %v1055_v27 = vadd.f32 %v1054_v25, %v1053_v24 }
 0x16e   : > { %v772_v30 = vmax.f32 %v722_v26, 0.0  ;;  %v1056_v31 = vpop.f32.mrb[18].mxu0  ;;  %v582_v32 = vadd.f32 %v1055_v27, %v438_v28  ;;  %v781_v28 = vld [vmem:[%s1850_s3] sm:$0xff] }
 0x16f   : > { %v1057_v33 = vpop.f32.mrb[19].mxu0 }
 0x170   : > { %v1299_v34 = vpack.c.bf16 %v772_v30, %v771_v29  ;;  %v1058_v35 = vadd.f32 %v1057_v33, %v1056_v31  ;;  %v727_v36 = vadd.f32 %v726_v54, %v582_v32 }
 0x172   : > { %v587_v38 = vadd.f32 %v1058_v35, %v443_v37  ;;  %v1059_v39 = vpop.f32.mrb[20].mxu0  ;;  %1300 = vmatpush3.bf16.msra.mxu1 %v1299_v34  ;;  %v773_v44 = vmax.f32 %v727_v36, 0.0 }
 0x173   : > { %v1060_v40 = vpop.f32.mrb[21].mxu0  ;;  %1301 = vmatprep.subr.bf16.mxu1 %v1514_v12 }
 0x174   : > { %v732_v41 = vadd.f32 %v1174_v52, %v587_v38  ;;  %v1061_v42 = vadd.f32 %v1060_v40, %v1059_v39 }
 0x176   : > { %v774_v45 = vmax.f32 %v732_v41, 0.0  ;;  %v1062_v46 = vpop.f32.mrb[22].mxu0  ;;  %v592_v47 = vadd.f32 %v1061_v42, %v448_v43 }
 0x177   : > { %v1063_v48 = vpop.f32.mrb[23].mxu0 }
 0x178   : > { %v1302_v49 = vpack.c.bf16 %v774_v45, %v773_v44  ;;  %v1064_v50 = vadd.f32 %v1063_v48, %v1062_v46  ;;  %v737_v51 = vadd.f32 %v736_v1, %v592_v47  ;;  %v463_v1 = vpop.permute.xlu1 %462 }
 0x17a   : > { %v597_v54 = vadd.f32 %v1064_v50, %v453_v53  ;;  %v1065_v55 = vpop.f32.mrb[24].mxu0  ;;  %1303 = vmatpush3.bf16.msra.mxu1 %v1302_v49  ;;  %v775_v59 = vmax.f32 %v737_v51, 0.0 }
 0x17b   : > { %v1066_v56 = vpop.f32.mrb[25].mxu0  ;;  %1304 = vmatprep.subr.bf16.mxu1 %v1514_v12 }
 0x17c   : > { %v742_v57 = vadd.f32 %v1793_v63, %v597_v54  ;;  %v1067_v52 = vadd.f32 %v1066_v56, %v1065_v55  ;;  %v473_v23 = vpop.permute.xlu1 %472 }
 0x17e   : > { %v776_v60 = vmax.f32 %v742_v57, 0.0  ;;  %v1068_v61 = vpop.f32.mrb[26].mxu0  ;;  %v602_v62 = vadd.f32 %v1067_v52, %v458_v58 }
 0x17f   : > { %v1069_v0 = vpop.f32.mrb[27].mxu0 }
 0x180   : > { %v1305_v2 = vpack.c.bf16 %v776_v60, %v775_v59  ;;  %v1070_v3 = vadd.f32 %v1069_v0, %v1068_v61  ;;  %v747_v4 = vadd.f32 %v746_v9, %v602_v62  ;;  %v795_v32 = vpop.permute.xlu1 %794 }
 0x182   : > { %v607_v5 = vadd.f32 %v1070_v3, %v463_v1  ;;  %v1071_v6 = vpop.f32.mrb[28].mxu0  ;;  %1306 = vmatpush3.bf16.msra.mxu1 %v1305_v2  ;;  %v777_v14 = vmax.f32 %v747_v4, 0.0 }
 0x183   : > { %v1072_v8 = vpop.f32.mrb[29].mxu0  ;;  %1307 = vmatprep.subr.bf16.mxu1 %v1514_v12 }
 0x184   : > { %v752_v10 = vadd.f32 %v1796_v7, %v607_v5  ;;  %v1073_v63 = vadd.f32 %v1072_v8, %v1071_v6 }
 0x186   : > { %v778_v15 = vmax.f32 %v752_v10, 0.0  ;;  %v1074_v16 = vpop.f32.mrb[30].mxu0  ;;  %v612_v17 = vadd.f32 %v1073_v63, %v468_v11 }
 0x187   : > { %v1075_v18 = vpop.f32.mrb[31].mxu0 }
 0x188   : > { %v1308_v19 = vpack.c.bf16 %v778_v15, %v777_v14  ;;  %v1076_v21 = vadd.f32 %v1075_v18, %v1074_v16  ;;  %v757_v9 = vadd.f32 %v1800_v22, %v612_v17  ;;  %v782_v22 = vld [vmem:[%s1850_s3 + $0x8] sm:$0xff] }
 0x18a   : > { %v617_v24 = vadd.f32 %v1076_v21, %v473_v23  ;;  %1309 = vmatpush3.bf16.msra.mxu1 %v1308_v19  ;;  %v779_v25 = vmax.f32 %v757_v9, 0.0 }
 0x18b   : > { %1310 = vmatprep.subr.bf16.mxu1 %v1514_v12  ;;  %v783_v12 = vld [vmem:[%s1850_s3 + $0x10] sm:$0xf] }
 0x18c   : > { %v762_v7 = vadd.f32 %v1798_v20, %v617_v24  ;;  %v790_v20 = vpop.permute.xlu0 %789 }
 0x18e   : > { %v780_v26 = vmax.f32 %v762_v7, 0.0 }
 0x190   : > { %v1311_v27 = vpack.c.bf16 %v780_v26, %v779_v25  ;;  %v800_v35 = vpop.permute.xlu0 %799 }
 0x192   : > { %1312 = vmatpush3.bf16.msra.mxu1 %v1311_v27 }
 0x195   : > { %1217 = vmatmul.mubr.f32.vlgmr.msra.gmra.mrb[16].mxu1 %v781_v28 }
 0x196   : > { %1219 = vmatprep.mubr.msk.f32.mxu1 %vm1515_vm0, %v1516_v13 }
 0x199   : > { %1220 = vmatmul.mubr.f32.gmra.mrb[18].mxu1 %v782_v22 }
 0x19a   : > { %1222 = vmatprep.mubr.msk.f32.mxu1 %vm1515_vm0, %v1516_v13 }
 0x19d   : > { %1223 = vmatmul.mubr.f32.gmra.mrb[20].mxu1 %v783_v12 }
 0x268   : > { %v868_v29 = vpop.f32.mrb[16].mxu1 }
 0x269   : > { %v869_v30 = vadd.f32 %v868_v29, %v790_v20  ;;  %v1218_v31 = vpop.f32.mrb[17].mxu1 }
 0x26b   : > { %882 = vst [vmem:[%s282_s12] sm:$0xff] %v869_v30 }
 0x26c   : > { %v873_v33 = vpop.f32.mrb[18].mxu1 }
 0x26d   : > { %v874_v13 = vadd.f32 %v873_v33, %v795_v32  ;;  %v1221_v34 = vpop.f32.mrb[19].mxu1 }
 0x26f   : > { %883 = vst [vmem:[%s282_s12 + $0x8] sm:$0xff] %v874_v13 }
 0x270   : > { %v878_v36 = vpop.f32.mrb[20].mxu1 }
 0x271   : > { %v879_v37 = vadd.f32 %v878_v36, %v800_v35  ;;  %v1224_v38 = vpop.f32.mrb[21].mxu1 }
 0x273   : > { %884 = vst [vmem:[%s282_s12 + $0x10] sm:$0xf] %v879_v37 }
 0x274 PF: > { %s19_s23 = sadd.s32 1, %s1505_s23   ;;  %s1865_s18 = smov %s1489_s19 }
 0x275   : > { %p16_p1 = scmp.ge.s32.totalorder %s19_s23, 4   ;;  %s1866_s19 = smov %s1493_s20 }
 0x276   : > { %s1867_s20 = smov %s1633_s29  ;;  %s1868_s21 = smov %s1501_s22 }
 0x277   : > { %s1869_s22 = smov %s1871_s6  ;;  %18 = sbr.rel (!%p16_p1) target bundleno = 5 (0x5), region = 84 }
 0x27e   :  { %912 = vsyncpa [#allocation3], 1 }
 0x27f   :  { %914 = vsyncpa [#allocation3 + $0x1], 1 }
 0x280   :  { %915 = vsyncpa [#allocation5], 1 }

</bundles_post_ra>
